<compile_context>
chip_gen: v7x
topology: tpu7x:2x2x1
jax: 0.10.0
libtpu: 0.0.40
codegen_flags: <defaults>
</compile_context>

<pallas_src>
import math
from functools import partial

import jax
import jax.numpy as jnp
from jax import lax
from jax.experimental import pallas as pl
from jax.experimental.pallas import tpu as pltpu

LOG_EPS = float(math.log(1e-8))


def _round_up(x, m):
    return ((x + m - 1) // m) * m


def _vmem_budget():
    """Usable scoped-VMEM budget (bytes), with headroom for Mosaic scratch."""
    try:
        cap = int(pltpu.get_tpu_info().vmem_capacity_bytes)
    except Exception:
        cap = 64 << 20                      # conservative (v7x per-TC VMEM)
    return max(16 << 20, min(cap - (12 << 20), 100 << 20))


def _pick_row_tile(rows, cols, a_pad, budget, max_tile=512):
    """Row tile for the scores kernel: multiple of 8, sized to the VMEM budget
    after the resident (cols, a_pad) fc1 weight (double-buffered)."""
    w_bytes = 2 * cols * a_pad * 4
    avail = max(2 << 20, (budget - w_bytes - (4 << 20)) // 2)
    tile = min(max_tile, _round_up(rows, 8))
    while tile > 8 and tile * cols * 4 > avail:
        tile //= 2
    return max(8, _round_up(tile, 8))


def _pick_square_tile(n, budget):
    """Finalize tile: 1024 on 128 MiB-VMEM parts, 512 otherwise; minimal pad."""
    max_tile = 1024 if budget >= (80 << 20) else 512
    if n <= max_tile:
        return _round_up(n, 8)
    best_t, best_pad = 128, None
    for t in (1024, 512, 384, 256, 128):
        if t > max_tile:
            continue
        pad = _round_up(n, t) - n
        if best_pad is None or pad < best_pad:
            best_t, best_pad = t, pad
    return best_t


def _pick_strip_col_tile(n0_pad, n_pad, budget):
    """Column tile for the one-pass strip sums kernel."""
    if n_pad % 128 != 0:
        return n_pad                        # small N: single full-width block
    avail = max(budget - (8 << 20), 4 << 20)
    tc = 512
    while tc > 128 and (2 * n0_pad * tc * 4 > avail or n_pad % tc != 0):
        tc //= 2
    return min(tc, n_pad)


# ----------------------------------------------------------------------------
# Kernel 1: fused per-type attention scores.
#   off_ref : SMEM (ng+1,) int32 scalar-prefetched group row offsets
#   x_ref   : (tm, N)       row tile of the row-concatenated probs
#   w1_ref  : (N, A_PAD)    head-folded, lane-padded fc1 weight (resident)
#   b1_ref  : (1, A_PAD)    lane-padded fc1 bias (resident)
#   w2_ref  : (1, A_PAD)    lane-padded fc2 weight (resident)
#   o_ref   : (1, NG_PAD, 1) raw per-group scores (sum-of-rows form), per split
#   acc_ref : VMEM (NG_PAD, A_PAD) per-group accumulator of tanh(x@W1f+b1)
# ----------------------------------------------------------------------------
def _scores_kernel(off_ref, x_ref, w1_ref, b1_ref, w2_ref, o_ref, acc_ref, *,
                   ng, inner):
    c = pl.program_id(0)        # megacore split (parallel)
    i = pl.program_id(1)        # row-tile index within the split (arbitrary)

    @pl.when(i == 0)
    def _init():
        acc_ref[...] = jnp.zeros_like(acc_ref)

    h = jnp.tanh(
        jnp.dot(x_ref[...], w1_ref[...], preferred_element_type=jnp.float32)
        + b1_ref[...])                                        # (tm, A_PAD)
    tm = h.shape[0]
    ng_pad, a_pad = acc_ref.shape

    # Per-group row reduction as one small MXU matmul with an indicator matrix.
    base = (c * inner + i) * tm
    rowv = base + lax.broadcasted_iota(jnp.int32, (1, tm), 1)  # global row ids
    sel_rows = []
    for g in range(ng_pad):
        if g < ng:
            m = jnp.logical_and(rowv >= off_ref[g], rowv < off_ref[g + 1])
            sel_rows.append(m.astype(jnp.float32))
        else:
            sel_rows.append(jnp.zeros((1, tm), jnp.float32))
    sel = jnp.concatenate(sel_rows, axis=0)                    # (NG_PAD, tm)
    acc_ref[...] += jnp.dot(sel, h, preferred_element_type=jnp.float32)

    @pl.when(i == pl.num_programs(1) - 1)
    def _finalize():
        # score_g (before /n_g) = sum_rows(tanh(..)) . w2 ; division by group
        # sizes happens in the wrapper (mean is linear).
        val = jnp.sum(acc_ref[...] * w2_ref[...], axis=1, keepdims=True)
        o_ref[...] = val.reshape(1, ng_pad, 1)


def fused_type_scores(x_cat, offsets, w1f, b1, w2, *, row_tile, n_split, budget):
    r_pad, n = x_cat.shape
    a_pad = w1f.shape[1]
    ng = int(offsets.shape[0]) - 1
    ng_pad = _round_up(ng, 8)
    inner = r_pad // (n_split * row_tile)

    out = pl.pallas_call(
        partial(_scores_kernel, ng=ng, inner=inner),
        out_shape=jax.ShapeDtypeStruct((n_split, ng_pad, 1), jnp.float32),
        grid_spec=pltpu.PrefetchScalarGridSpec(
            num_scalar_prefetch=1,
            grid=(n_split, inner),
            in_specs=[
                pl.BlockSpec((row_tile, n), lambda c, i, off: (c * inner + i, 0)),
                pl.BlockSpec((w1f.shape[0], a_pad), lambda c, i, off: (0, 0)),
                pl.BlockSpec((1, a_pad), lambda c, i, off: (0, 0)),
                pl.BlockSpec((1, a_pad), lambda c, i, off: (0, 0)),
            ],
            out_specs=pl.BlockSpec((1, ng_pad, 1), lambda c, i, off: (c, 0, 0)),
            scratch_shapes=[pltpu.VMEM((ng_pad, a_pad), jnp.float32)],
        ),
        compiler_params=pltpu.CompilerParams(
            dimension_semantics=("parallel", "arbitrary"),
            vmem_limit_bytes=budget),
    )(offsets, x_cat, w1f, b1, w2)
    # sum the per-split partials, drop the NG padding
    return out.sum(axis=0)[:ng, 0]


# ----------------------------------------------------------------------------
# Kernel 2: ONE pass over the non-zero strip  top = M[:n0_pad, :]  producing
# row sums (resident accumulator) and column sums (per column block).
# ----------------------------------------------------------------------------
def _strip_sums_kernel(top_ref, rsum_ref, csum_ref):
    gj = pl.program_id(0)

    @pl.when(gj == 0)
    def _init():
        rsum_ref[...] = jnp.zeros_like(rsum_ref)

    t = top_ref[...]                                           # (n0_pad, Tc)
    rsum_ref[...] += jnp.sum(t, axis=1, keepdims=True)
    csum_ref[...] = jnp.sum(t, axis=0, keepdims=True)


def strip_row_col_sums(top, budget):
    n0_pad, n_pad = top.shape
    tc = _pick_strip_col_tile(n0_pad, n_pad, budget)
    rsum, csum = pl.pallas_call(
        _strip_sums_kernel,
        out_shape=(jax.ShapeDtypeStruct((n0_pad, 1), jnp.float32),
                   jax.ShapeDtypeStruct((1, n_pad), jnp.float32)),
        grid=(n_pad // tc,),
        in_specs=[pl.BlockSpec((n0_pad, tc), lambda j: (0, j))],
        out_specs=(pl.BlockSpec((n0_pad, 1), lambda j: (0, 0)),
                   pl.BlockSpec((1, tc), lambda j: (0, j))),
        compiler_params=pltpu.CompilerParams(
            dimension_semantics=("arbitrary",),
            vmem_limit_bytes=budget),
    )(top)
    return rsum, csum


# ----------------------------------------------------------------------------
# Kernel 3: fused block-scatter + symmetrize + de-diag + row-normalize + log.
# Each (T, T) output tile of  log((M + M^T - diag) / rowsum + eps)  is built on
# the fly from at most two strip tiles; tiles outside the strip's row/col span
# are constant-filled with log(1e-8).  Clamped index maps keep out-of-strip
# reads elided by the pipeline's same-block skip.
# ----------------------------------------------------------------------------
def _fused_finalize_kernel(mrow_ref, mcol_ref, rs_ref, o_ref, *, nb):
    gj = pl.program_id(0)        # output column block (outer)
    gi = pl.program_id(1)        # output row block (inner)
    t = o_ref.shape[0]
    has_r = gi < nb              # strip rows land in this row block
    has_c = gj < nb              # strip rows land (transposed) in this col block

    def _emit(s):
        inv = pl.reciprocal(rs_ref[...] + 1e-8, approx=True)   # (T, 1), EUP vrcp
        o_ref[...] = jnp.log(s * inv + 1e-8)

    @pl.when(jnp.logical_and(has_r, has_c))
    def _both():
        s = mrow_ref[...] + mcol_ref[...].T

        @pl.when(gi == gj)
        def _diag():
            r = lax.broadcasted_iota(jnp.int32, (t, t), 0)
            c = lax.broadcasted_iota(jnp.int32, (t, t), 1)
            _emit(jnp.where(r == c, 0.0, s))

        @pl.when(gi != gj)
        def _nodiag():
            _emit(s)

    @pl.when(jnp.logical_and(has_r, jnp.logical_not(has_c)))
    def _row_only():
        _emit(mrow_ref[...])

    @pl.when(jnp.logical_and(jnp.logical_not(has_r), has_c))
    def _col_only():
        _emit(mcol_ref[...].T)

    @pl.when(jnp.logical_and(jnp.logical_not(has_r), jnp.logical_not(has_c)))
    def _const():
        o_ref[...] = jnp.full(o_ref.shape, LOG_EPS, o_ref.dtype)


def fused_symmetrize_normalize_log(top, rs, *, tile, n_pad, budget):
    n0_pad = top.shape[0]
    nb = n0_pad // tile
    g = n_pad // tile
    rs2d = rs.reshape(n_pad, 1)

    return pl.pallas_call(
        partial(_fused_finalize_kernel, nb=nb),
        out_shape=jax.ShapeDtypeStruct((n_pad, n_pad), jnp.float32),
        grid=(g, g),
        in_specs=[
            # M[row-block gi, col-block gj]  (clamped when gi is past the strip)
            pl.BlockSpec((tile, tile),
                         lambda gj, gi: (jnp.minimum(gi, nb - 1), gj)),
            # M[row-block gj, col-block gi]  (fully frozen when gj is past the strip)
            pl.BlockSpec((tile, tile),
                         lambda gj, gi: (jnp.minimum(gj, nb - 1),
                                         jnp.where(gj < nb, gi, 0))),
            pl.BlockSpec((tile, 1), lambda gj, gi: (gi, 0)),
        ],
        out_specs=pl.BlockSpec((tile, tile), lambda gj, gi: (gi, gj)),
        compiler_params=pltpu.CompilerParams(
            dimension_semantics=("parallel", "parallel"),
            vmem_limit_bytes=budget),
    )(top, top, rs2d)


# ----------------------------------------------------------------------------
# TypeAttentionLayer forward (JAX wrapper around the Pallas kernels)
# ----------------------------------------------------------------------------
class TypeAttentionLayer:
    def __init__(self, out_dim, num_heads, attn_vec_dim, key):
        self.out_dim = out_dim
        self.num_heads = num_heads
        self.attn_vec_dim = attn_vec_dim

        k1, k2, k3 = jax.random.split(key, 3)
        d_in = out_dim * num_heads
        gain = 1.414
        # xavier_normal_ on fc1.weight (shape (attn_vec_dim, d_in))
        std1 = gain * math.sqrt(2.0 / (d_in + attn_vec_dim))
        w1 = std1 * jax.random.normal(k1, (attn_vec_dim, d_in), jnp.float32)
        # default nn.Linear bias init: U(-1/sqrt(fan_in), 1/sqrt(fan_in))
        bound = 1.0 / math.sqrt(d_in)
        b1 = jax.random.uniform(k2, (attn_vec_dim,), jnp.float32, -bound, bound)
        # xavier_normal_ on fc2.weight (shape (1, attn_vec_dim)); fc2 has no bias
        std2 = gain * math.sqrt(2.0 / (attn_vec_dim + 1))
        w2 = std2 * jax.random.normal(k3, (1, attn_vec_dim), jnp.float32)

        # Raw params (used by the pure-JAX reference check).
        w1_t = jnp.asarray(w1).T                              # (d_in, A)
        self._w1_t_full = w1_t
        self._b1_full = jnp.asarray(b1)                       # (A,)
        self._w2_full = jnp.asarray(w2)[0]                    # (A,)

        # Head folding: prob.repeat(1, H) @ W1.T == prob @ sum_h W1.T[h*N:(h+1)*N].
        w1_folded = w1_t.reshape(num_heads, out_dim, attn_vec_dim).sum(axis=0)

        # Lane-align the attention dim (zero columns contribute nothing).
        a_pad = _round_up(attn_vec_dim, 128)
        self.a_pad = a_pad
        self.w1f = jnp.zeros((out_dim, a_pad), jnp.float32).at[:, :attn_vec_dim].set(w1_folded)
        self.b1 = jnp.zeros((1, a_pad), jnp.float32).at[0, :attn_vec_dim].set(self._b1_full)
        self.w2 = jnp.zeros((1, a_pad), jnp.float32).at[0, :attn_vec_dim].set(self._w2_full)

    def __call__(self, probs, nums_nodes, t_id):
        N = sum(nums_nodes)
        ng = len(probs)
        assert N == self.out_dim and ng == 4
        budget = _vmem_budget()
        pf = [p.astype(jnp.float32) for p in probs]

        # --- 1) fused per-type attention scores (one Pallas call) ------------
        R = sum(int(p.shape[0]) for p in pf)
        n_split = 2                                  # v7x megacore split
        row_tile = _pick_row_tile(R, N, self.a_pad, budget)
        r_pad = _round_up(R, n_split * row_tile)
        parts = list(pf)
        if r_pad != R:
            parts.append(jnp.zeros((r_pad - R, N), jnp.float32))
        x_cat = jnp.concatenate(parts, axis=0)       # (r_pad, N), built padded

        offs = [0]
        for n_i in nums_nodes:
            offs.append(offs[-1] + int(n_i))
        offsets = jnp.asarray(offs, jnp.int32)

        raw = fused_type_scores(x_cat, offsets, self.w1f, self.b1, self.w2,
                                row_tile=row_tile, n_split=n_split,
                                budget=budget)                        # (ng,)
        counts = jnp.asarray(nums_nodes, jnp.float32)
        alpha = jax.nn.softmax(raw / counts)         # mean = sum / n_i

        bu = alpha[0] / (alpha[0] + alpha[1])
        bs = alpha[0] / (alpha[0] + alpha[2])
        bl = alpha[0] / (alpha[0] + alpha[3])        # unused (matches torch code)
        ub = alpha[1] / (alpha[0] + alpha[1])
        sb = alpha[2] / (alpha[0] + alpha[2])
        lb = alpha[3] / (alpha[0] + alpha[3])        # unused (matches torch code)

        # --- 2) build only the non-zero strip  M[:n0, :]  (never the NxN) ----
        n0 = int(t_id[0][1])
        tile = _pick_square_tile(N, budget)
        n_pad = _round_up(N, tile)
        n0_pad = _round_up(n0, tile)
        # TODO(synk): build the strip tiles inside the sums/finalize kernels
        # directly from probs[0..3] (scalar-prefetched t_id offsets + mixing
        # scalars) so even the (n0, N) strip never round-trips HBM.
        top = jnp.zeros((n0_pad, n_pad), jnp.float32)
        blk1 = bu * pf[0][:, t_id[1][0]:t_id[1][1]] + (ub * pf[1][:, :n0]).T
        top = top.at[:n0, t_id[1][0]:t_id[1][1]].set(blk1)
        blk2 = bs * pf[0][:, t_id[2][0]:t_id[2][1]] + (sb * pf[2][:, :n0]).T
        top = top.at[:n0, t_id[2][0]:t_id[2][1]].set(blk2)
        # NOTE: original torch code reuses bs/sb (not bl/lb) for the 4th type.
        blk3 = bs * pf[0][:, t_id[3][0]:t_id[3][1]] + (sb * pf[3][:, :n0]).T
        top = top.at[:n0, t_id[3][0]:t_id[3][1]].set(blk3)

        # --- 3) one-pass row/col sums of the strip (Pallas) -------------------
        rsum, csum = strip_row_col_sums(top, budget)
        diag = top[jnp.arange(n0_pad), jnp.arange(n0_pad)]     # tiny gather
        rs = csum[0]
        rs = rs.at[:n0_pad].add(rsum[:, 0] - 2.0 * diag)       # (n_pad,)

        # --- 4) fused symmetrize + de-diag + normalize + log (Pallas) ---------
        out = fused_symmetrize_normalize_log(top, rs, tile=tile, n_pad=n_pad,
                                             budget=budget)
        return out if n_pad == N else out[:N, :N]


# ----------------------------------------------------------------------------
# Pure-JAX reference (mirrors the torch code literally) for a correctness check
# ----------------------------------------------------------------------------
def reference_forward(layer, probs, nums_nodes, t_id):
    scores = []
    for prob in probs:
        pr = jnp.tile(prob, (1, layer.num_heads))
        h = jnp.tanh(pr @ layer._w1_t_full + layer._b1_full)
        scores.append(jnp.dot(jnp.mean(h, axis=0), layer._w2_full))
    alpha = jax.nn.softmax(jnp.stack(scores))
    bu = alpha[0] / (alpha[0] + alpha[1])
    bs = alpha[0] / (alpha[0] + alpha[2])
    ub = alpha[1] / (alpha[0] + alpha[1])
    sb = alpha[2] / (alpha[0] + alpha[2])
    N = sum(nums_nodes)
    n0 = t_id[0][1]
    m = jnp.zeros((N, N), jnp.float32)
    m = m.at[:n0, t_id[1][0]:t_id[1][1]].set(
        bu * probs[0][:, t_id[1][0]:t_id[1][1]] + (ub * probs[1][:, :n0]).T)
    m = m.at[:n0, t_id[2][0]:t_id[2][1]].set(
        bs * probs[0][:, t_id[2][0]:t_id[2][1]] + (sb * probs[2][:, :n0]).T)
    m = m.at[:n0, t_id[3][0]:t_id[3][1]].set(
        bs * probs[0][:, t_id[3][0]:t_id[3][1]] + (sb * probs[3][:, :n0]).T)
    m = m + m.T
    m = m - jnp.diag(jnp.diag(m))
    rs = jnp.sum(m, axis=1) + 1e-8
    m = (1.0 / rs)[:, None] * m
    return jnp.log(m + 1e-8)


if __name__ == "__main__":
    key = jax.random.PRNGKey(0)
    k_params, k_p0, k_p1, k_p2, k_p3 = jax.random.split(key, 5)

    # Small deterministic shapes consistent with the module:
    # out_dim must equal sum(nums_nodes) (probs have N columns and feed fc1).
    nums_nodes = [5, 4, 3, 4]
    N = sum(nums_nodes)                    # 16
    out_dim = N
    num_heads = 2
    attn_vec_dim = 8
    t_id = [[0, 5], [5, 9], [9, 12], [12, 16]]

    probs = [
        jax.random.uniform(k_p0, (nums_nodes[0], N), jnp.float32),
        jax.random.uniform(k_p1, (nums_nodes[1], N), jnp.float32),
        jax.random.uniform(k_p2, (nums_nodes[2], N), jnp.float32),
        jax.random.uniform(k_p3, (nums_nodes[3], N), jnp.float32),
    ]

    layer = TypeAttentionLayer(out_dim, num_heads, attn_vec_dim, k_params)
    out = layer(probs, nums_nodes, t_id)
    out = jax.block_until_ready(out)

    assert out.shape == (N, N)
    assert bool(jnp.all(jnp.isfinite(out)))

    ref = reference_forward(layer, probs, nums_nodes, t_id)
    assert bool(jnp.allclose(out, ref, rtol=1e-2, atol=1e-2))

    print("KERNEL_OK")
</pallas_src>

<mosaic_0001>
module attributes {stable_mosaic.version = 11 : i64} {
  func.func @_scores_kernel(%arg0: i32, %arg1: i32, %arg2: memref<5xi32, #tpu.memory_space<smem>>, %arg3: memref<16x16xf32, #tpu.memory_space<vmem>>, %arg4: memref<16x128xf32, #tpu.memory_space<vmem>>, %arg5: memref<1x128xf32, #tpu.memory_space<vmem>>, %arg6: memref<1x128xf32, #tpu.memory_space<vmem>>, %arg7: memref<1x8x1xf32, #tpu.memory_space<vmem>>, %arg8: memref<8x128xf32, #tpu.memory_space<vmem>>) attributes {dimension_semantics = [#tpu.dimension_semantics<parallel>, #tpu.dimension_semantics<arbitrary>], iteration_bounds = array<i64: 2, 1>, scalar_prefetch = 1 : i64, scratch_operands = 1 : i64, tpu.core_type = #tpu.core_type<tc>, window_params = [{transform_indices = @transform_0, window_bounds = array<i64: 16, 16>}, {pipeline_mode = #tpu.pipeline_mode<synchronous>, transform_indices = @transform_1, window_bounds = array<i64: 16, 128>}, {pipeline_mode = #tpu.pipeline_mode<synchronous>, transform_indices = @transform_2, window_bounds = array<i64: 1, 128>}, {pipeline_mode = #tpu.pipeline_mode<synchronous>, transform_indices = @transform_3, window_bounds = array<i64: 1, 128>}, {transform_indices = @transform_4, window_bounds = array<i64: 1, 8, 1>}]} {
    %c0_i32 = arith.constant 0 : i32
    %0 = arith.cmpi eq, %arg1, %c0_i32 : i32
    %1 = arith.extui %0 : i1 to i32
    %c0_i32_0 = arith.constant 0 : i32
    %2 = arith.cmpi ne, %1, %c0_i32_0 : i32
    scf.if %2 {
      %cst_21 = arith.constant 0.000000e+00 : f32
      %64 = vector.broadcast %cst_21 : f32 to vector<8x128xf32>
      %c0_22 = arith.constant 0 : index
      %c0_23 = arith.constant 0 : index
      %65 = vector.load %arg8[%c0_22, %c0_23] : memref<8x128xf32, #tpu.memory_space<vmem>>, vector<8x128xf32>
      tpu.vector_store %arg8[%c0_22, %c0_23], %64 {strides = array<i32>} : memref<8x128xf32, #tpu.memory_space<vmem>>, vector<8x128xf32>,
    } else {
    }
    %c0 = arith.constant 0 : index
    %c0_1 = arith.constant 0 : index
    %3 = vector.load %arg3[%c0, %c0_1] : memref<16x16xf32, #tpu.memory_space<vmem>>, vector<16x16xf32>
    %c0_2 = arith.constant 0 : index
    %c0_3 = arith.constant 0 : index
    %4 = vector.load %arg4[%c0_2, %c0_3] : memref<16x128xf32, #tpu.memory_space<vmem>>, vector<16x128xf32>
    %cst = arith.constant dense<0.000000e+00> : vector<16x128xf32>
    %5 = tpu.matmul %3, %4, %cst {dimension_numbers = #tpu.dot_dimension_numbers<[1], [0], [0], [1], [0, 0, 1, 1], [], []>} : vector<16x16xf32>, vector<16x128xf32>, vector<16x128xf32> -> vector<16x128xf32>
    %c0_4 = arith.constant 0 : index
    %c0_5 = arith.constant 0 : index
    %6 = vector.load %arg5[%c0_4, %c0_5] : memref<1x128xf32, #tpu.memory_space<vmem>>, vector<1x128xf32>
    %7 = vector.broadcast %6 : vector<1x128xf32> to vector<16x128xf32>
    %8 = arith.addf %5, %7 : vector<16x128xf32>
    %9 = math.tanh %8 : vector<16x128xf32>
    %c1_i32 = arith.constant 1 : i32
    %10 = arith.muli %arg0, %c1_i32 : i32
    %11 = arith.addi %10, %arg1 : i32
    %c16_i32 = arith.constant 16 : i32
    %12 = arith.muli %11, %c16_i32 : i32
    %13 = tpu.iota {dimensions = array<i32: 1>} : vector<1x16xi32>
    %14 = vector.broadcast %12 : i32 to vector<1x16xi32>
    %15 = arith.addi %14, %13 : vector<1x16xi32>
    %c0_6 = arith.constant 0 : index
    %16 = memref.load %arg2[%c0_6] : memref<5xi32, #tpu.memory_space<smem>>
    %17 = vector.broadcast %16 : i32 to vector<1x16xi32>
    %18 = arith.cmpi sge, %15, %17 : vector<1x16xi32>
    %c1 = arith.constant 1 : index
    %19 = memref.load %arg2[%c1] : memref<5xi32, #tpu.memory_space<smem>>
    %20 = vector.broadcast %19 : i32 to vector<1x16xi32>
    %21 = arith.cmpi slt, %15, %20 : vector<1x16xi32>
    %22 = arith.andi %18, %21 : vector<1x16xi1>
    %23 = arith.extui %22 : vector<1x16xi1> to vector<1x16xi32>
    %24 = arith.sitofp %23 : vector<1x16xi32> to vector<1x16xf32>
    %c1_7 = arith.constant 1 : index
    %25 = memref.load %arg2[%c1_7] : memref<5xi32, #tpu.memory_space<smem>>
    %26 = vector.broadcast %25 : i32 to vector<1x16xi32>
    %27 = arith.cmpi sge, %15, %26 : vector<1x16xi32>
    %c2 = arith.constant 2 : index
    %28 = memref.load %arg2[%c2] : memref<5xi32, #tpu.memory_space<smem>>
    %29 = vector.broadcast %28 : i32 to vector<1x16xi32>
    %30 = arith.cmpi slt, %15, %29 : vector<1x16xi32>
    %31 = arith.andi %27, %30 : vector<1x16xi1>
    %32 = arith.extui %31 : vector<1x16xi1> to vector<1x16xi32>
    %33 = arith.sitofp %32 : vector<1x16xi32> to vector<1x16xf32>
    %c2_8 = arith.constant 2 : index
    %34 = memref.load %arg2[%c2_8] : memref<5xi32, #tpu.memory_space<smem>>
    %35 = vector.broadcast %34 : i32 to vector<1x16xi32>
    %36 = arith.cmpi sge, %15, %35 : vector<1x16xi32>
    %c3 = arith.constant 3 : index
    %37 = memref.load %arg2[%c3] : memref<5xi32, #tpu.memory_space<smem>>
    %38 = vector.broadcast %37 : i32 to vector<1x16xi32>
    %39 = arith.cmpi slt, %15, %38 : vector<1x16xi32>
    %40 = arith.andi %36, %39 : vector<1x16xi1>
    %41 = arith.extui %40 : vector<1x16xi1> to vector<1x16xi32>
    %42 = arith.sitofp %41 : vector<1x16xi32> to vector<1x16xf32>
    %c3_9 = arith.constant 3 : index
    %43 = memref.load %arg2[%c3_9] : memref<5xi32, #tpu.memory_space<smem>>
    %44 = vector.broadcast %43 : i32 to vector<1x16xi32>
    %45 = arith.cmpi sge, %15, %44 : vector<1x16xi32>
    %c4 = arith.constant 4 : index
    %46 = memref.load %arg2[%c4] : memref<5xi32, #tpu.memory_space<smem>>
    %47 = vector.broadcast %46 : i32 to vector<1x16xi32>
    %48 = arith.cmpi slt, %15, %47 : vector<1x16xi32>
    %49 = arith.andi %45, %48 : vector<1x16xi1>
    %50 = arith.extui %49 : vector<1x16xi1> to vector<1x16xi32>
    %51 = arith.sitofp %50 : vector<1x16xi32> to vector<1x16xf32>
    %cst_10 = arith.constant 0.000000e+00 : f32
    %52 = vector.broadcast %cst_10 : f32 to vector<1x16xf32>
    %cst_11 = arith.constant 0.000000e+00 : f32
    %53 = vector.broadcast %cst_11 : f32 to vector<1x16xf32>
    %cst_12 = arith.constant 0.000000e+00 : f32
    %54 = vector.broadcast %cst_12 : f32 to vector<1x16xf32>
    %cst_13 = arith.constant 0.000000e+00 : f32
    %55 = vector.broadcast %cst_13 : f32 to vector<1x16xf32>
    %56 = tpu.concatenate %24, %33, %42, %51, %52, %53, %54, %55 in 0 : vector<1x16xf32>, vector<1x16xf32>, vector<1x16xf32>, vector<1x16xf32>, vector<1x16xf32>, vector<1x16xf32>, vector<1x16xf32>, vector<1x16xf32> -> vector<8x16xf32>
    %c0_14 = arith.constant 0 : index
    %c0_15 = arith.constant 0 : index
    %57 = vector.load %arg8[%c0_14, %c0_15] : memref<8x128xf32, #tpu.memory_space<vmem>>, vector<8x128xf32>
    %cst_16 = arith.constant dense<0.000000e+00> : vector<8x128xf32>
    %58 = tpu.matmul %56, %9, %cst_16 {dimension_numbers = #tpu.dot_dimension_numbers<[1], [0], [0], [1], [0, 0, 1, 1], [], []>} : vector<8x16xf32>, vector<16x128xf32>, vector<8x128xf32> -> vector<8x128xf32>
    %59 = arith.addf %57, %58 : vector<8x128xf32>
    %c0_17 = arith.constant 0 : index
    %c0_18 = arith.constant 0 : index
    %60 = vector.load %arg8[%c0_17, %c0_18] : memref<8x128xf32, #tpu.memory_space<vmem>>, vector<8x128xf32>
    tpu.vector_store %arg8[%c0_17, %c0_18], %59 {strides = array<i32>} : memref<8x128xf32, #tpu.memory_space<vmem>>, vector<8x128xf32>,
    %c0_i32_19 = arith.constant 0 : i32
    %61 = arith.cmpi eq, %arg1, %c0_i32_19 : i32
    %62 = arith.extui %61 : i1 to i32
    %c0_i32_20 = arith.constant 0 : i32
    %63 = arith.cmpi ne, %62, %c0_i32_20 : i32
    scf.if %63 {
      %c0_21 = arith.constant 0 : index
      %c0_22 = arith.constant 0 : index
      %64 = vector.load %arg8[%c0_21, %c0_22] : memref<8x128xf32, #tpu.memory_space<vmem>>, vector<8x128xf32>
      %c0_23 = arith.constant 0 : index
      %c0_24 = arith.constant 0 : index
      %65 = vector.load %arg6[%c0_23, %c0_24] : memref<1x128xf32, #tpu.memory_space<vmem>>, vector<1x128xf32>
      %66 = vector.broadcast %65 : vector<1x128xf32> to vector<8x128xf32>
      %67 = arith.mulf %64, %66 : vector<8x128xf32>
      %cst_25 = arith.constant dense<0.000000e+00> : vector<8xf32>
      %68 = vector.multi_reduction <add>, %67, %cst_25 [1] : vector<8x128xf32> to vector<8xf32>
      %69 = vector.shape_cast %68 : vector<8xf32> to vector<8x1xf32>
      %70 = vector.shape_cast %69 : vector<8x1xf32> to vector<1x8x1xf32>
      %c0_26 = arith.constant 0 : index
      %c0_27 = arith.constant 0 : index
      %c0_28 = arith.constant 0 : index
      %71 = vector.load %arg7[%c0_26, %c0_27, %c0_28] : memref<1x8x1xf32, #tpu.memory_space<vmem>>, vector<1x8x1xf32>
      tpu.vector_store %arg7[%c0_26, %c0_27, %c0_28], %70 {strides = array<i32>} : memref<1x8x1xf32, #tpu.memory_space<vmem>>, vector<1x8x1xf32>,
    } else {
    }
    return
  }
  func.func @transform_0(%arg0: i32, %arg1: i32, %arg2: memref<5xi32, #tpu.memory_space<smem>>) -> (i32, i32) {
    %c1_i32 = arith.constant 1 : i32
    %0 = arith.muli %arg0, %c1_i32 : i32
    %1 = arith.addi %0, %arg1 : i32
    %c0_i32 = arith.constant 0 : i32
    %c0_i32_0 = arith.constant 0 : i32
    return %1, %c0_i32 : i32, i32
  }
  func.func @transform_1(%arg0: i32, %arg1: i32, %arg2: memref<5xi32, #tpu.memory_space<smem>>) -> (i32, i32) {
    %c0_i32 = arith.constant 0 : i32
    %c0_i32_0 = arith.constant 0 : i32
    %c0_i32_1 = arith.constant 0 : i32
    return %c0_i32, %c0_i32_0 : i32, i32
  }
  func.func @transform_2(%arg0: i32, %arg1: i32, %arg2: memref<5xi32, #tpu.memory_space<smem>>) -> (i32, i32) {
    %c0_i32 = arith.constant 0 : i32
    %c0_i32_0 = arith.constant 0 : i32
    %c0_i32_1 = arith.constant 0 : i32
    return %c0_i32, %c0_i32_0 : i32, i32
  }
  func.func @transform_3(%arg0: i32, %arg1: i32, %arg2: memref<5xi32, #tpu.memory_space<smem>>) -> (i32, i32) {
    %c0_i32 = arith.constant 0 : i32
    %c0_i32_0 = arith.constant 0 : i32
    %c0_i32_1 = arith.constant 0 : i32
    return %c0_i32, %c0_i32_0 : i32, i32
  }
  func.func @transform_4(%arg0: i32, %arg1: i32, %arg2: memref<5xi32, #tpu.memory_space<smem>>) -> (i32, i32, i32) {
    %c0_i32 = arith.constant 0 : i32
    %c0_i32_0 = arith.constant 0 : i32
    %c0_i32_1 = arith.constant 0 : i32
    return %arg0, %c0_i32, %c0_i32_0 : i32, i32, i32
  }
}

</mosaic_0001>

<bundles_post_ra>
// kernel: tpu_custom_call.1
= control target key start
LH: loop header
LB: loop body
LE: loop exit
PB: predicated region body
PF: predicated region fallthrough
CT: control target
= control target key end

     0   :  { %s740_s0 = inlined_call_operand.vmem [shape: s32[5], index: 0, kind: input, shape index: {}]   ;;  %s741_s1 = inlined_call_operand.vmem [shape: f32[32,16], index: 1, kind: input, shape index: {}]   ;;  %s742_s2 = inlined_call_operand.vmem [shape: f32[16,128], index: 2, kind: input, shape index: {}]   ;;  %s743_s3 = inlined_call_operand.vmem [shape: f32[1,128], index: 3, kind: input, shape index: {}]   ;;  %s744_s4 = inlined_call_operand.vmem [shape: f32[1,128], index: 4, kind: input, shape index: {}]   ;;  %s745_s5 = inlined_call_operand.vmem [shape: f32[2,8,1], index: 5, kind: output, shape index: {}]  }
   0x1   :  { %s10_s20 = sshll.u32 %s740_s0, 4  ;;  %s11_s20 = int_to_ptr.vmem [resolvable:$true] %s10_s20 }
   0x2   :  { %s611_s21 = scalar_lea.vmem %s11_s20, 16  ;;  %p616_p1 = scmp.lt.s32.totalorder %s11_s20, %s11_s20 }
   0x3   :  { %p612_p0 = scmp.ne.s32.totalorder %s11_s20, %s611_s21  ;;  %p617_p2 = scmp.lt.s32.totalorder %s611_s21, %s611_s21 }
   0x5   :  { %p618_p3 = por %p617_p2, %p616_p1 }
   0x7   :  { %p619_p4 = pnand %p618_p3, %p612_p0 }
   0x9   :  { %622 = shalt.err (!%p619_p4)  }
   0xa   :  { %s649_s22 = smov [#allocation4]  }
   0xb   :  { %13 = dma.vmem_to_smem %s11_s20, 16, %s649_s22, [#allocation3] }
   0xc   :  { %635 = dma.done.wait [#allocation3], 16 }
   0xd   :  { %636 = vsyncadd [#allocation3], 4294967280 }
   0xe   :  { %15 = sfence }
   0xf   :  { %s686_s23 = smov 0   ;;  %s688_s24 = smov 0  }
  0x10   :  { %s690_s25 = smov 0  }
  0x11 LB: > { %s33_s0 = sadd.s32 1, %s643_s24  ;;  %p531_p5 = scmp.ge.s32.totalorder %s647_s25, 1  ;;  %s647_s25 = sphi %s690_s25, %s21_s25   ;;  %s643_s24 = sphi %s688_s24, %s747_s24   ;;  %s639_s23 = sphi %s686_s23, %s746_s23  }
  0x12   : > { %p35_p6 = scmp.ge.s32.totalorder %s33_s0, 2  ;;  %p186_p7 = scmp.lt.s32.totalorder %s647_s25, 3 }
  0x14   : > { %s749_s0 = smov (%p35_p6, %s33_s0), 0  ;;  %p187_p8 = pnand %p531_p5, %p186_p7 }
  0x15   : > { %v231_v0 = vld [vmem:[%s742_s2] sm:$0xff] (!%p187_p8)  ;;  %v232_v1 = vld [vmem:[%s742_s2 + $0x8] sm:$0xff] (!%p187_p8)  ;;  %s532_s30 = sshll.u32 (!%p187_p8), %s639_s23, 1  ;;  %vm240_vm0 = vcmask (!%p187_p8), 130048   ;;  %v650_v5 = vmov (!%p187_p8), 0.0|0.0   ;;  %vm651_vm1 = vmmov (!%p187_p8), 0   ;;  %v326_v7 = vlaneseq (!%p187_p8) }
  0x16   : > { %190 = sbr.rel (%p187_p8) target bundleno = 622 (0x26e), region = 36  ;;  %v572_v2 = vpack.c.bf16 (!%p187_p8), %v232_v1, %v231_v0  ;;  %p214_p9 = scmp.lt.s32.totalorder (!%p187_p8), %s532_s30, 3  ;;  %576 = vmatprep.subr.bf16.mxu1 (!%p187_p8), %v650_v5  ;;  %v652_v6 = vmov (!%p187_p8), 0.0   ;;  %vm360_vm13 = vcmask (!%p187_p8), 1040384   ;;  %v535_v18 = vld [vmem:[%s743_s3] ss:$0 sm:$0xff] (!%p187_p8) }
  0x17   : > { %569 = vmatprep.mubr.msk.f32.mxu1 (!%p187_p8), %vm651_vm1, %v652_v6  ;;  %s330_s10 = sld [smem:[#allocation4]] (!%p187_p8)  ;;  %s539_s11 = sld [smem:[#allocation4 + $0x1]] (!%p187_p8)  ;;  %v327_v8 = vand.u32 (!%p187_p8), 127, %v326_v7  ;;  %vm362_vm15 = vcmask (!%p187_p8), 1041408   ;;  %vm364_vm1 = vcmask (!%p187_p8), 1042432  }
  0x18   : > { %573 = vmatprep.subr.bf16.mxu0 (!%p187_p8), %v572_v2  ;;  %s538_s12 = sshll.u32 (!%p187_p8), %s639_s23, 4  ;;  %s541_s13 = sld [smem:[#allocation4 + $0x2]] (!%p187_p8)  ;;  %v548_v35 = vld [vmem:[%s744_s4] ss:$0 sm:$0xff] (!%p187_p8) }
  0x19   : > { %575 = vmatpush3.bf16.msra.mxu0 (!%p187_p8), %v572_v2  ;;  %v328_v9 = vstv (!%p187_p8), %s538_s12  ;;  %s543_s14 = sld [smem:[#allocation4 + $0x3]] (!%p187_p8)  ;;  %s545_s15 = sld [smem:[#allocation4 + $0x4]] (!%p187_p8) }
  0x1a   : > { %v329_v10 = vadd.s32 (!%p187_p8), %v328_v9, %v327_v8  ;;  %p220_p10 = scmp.lt.s32.totalorder (!%p187_p8), %s639_s23, 1 }
  0x1d   : > { %s751_s30 = smov (!%p214_p9, %s532_s30), 3  ;;  %v331_v11 = vstv %s330_s10  ;;  %v334_v12 = vstv %s539_s11  ;;  %s753_s23 = smov (!%p220_p10, %s639_s23), 1 }
  0x1e   : > { %s533_s6 = sshll.u32 %s751_s30, 3  ;;  %v341_v13 = vstv %s541_s13  ;;  %vm332_vm2 = vcmp.ge.s32.totalorder %v329_v10, %v331_v11  ;;  %vm335_vm3 = vcmp.lt.s32.totalorder %v329_v10, %v334_v12  ;;  %vm339_vm4 = vcmp.ge.s32.totalorder %v329_v10, %v334_v12  ;;  %s534_s20 = sshll.u32 %s753_s23, 3 }
  0x1f   : > { %s217_s9 = scalar_lea.vmem %s741_s1, %s533_s6  ;;  %vm342_vm5 = vcmp.lt.s32.totalorder %v329_v10, %v341_v13  ;;  %v348_v14 = vstv %s543_s14  ;;  %vm336_vm6 = vmand %vm332_vm2, %vm335_vm3  ;;  %vm346_vm8 = vcmp.ge.s32.totalorder %v329_v10, %v341_v13  ;;  %v355_v15 = vstv %s545_s15  ;;  %s223_s26 = scalar_lea.vmem %s745_s5, %s534_s20 }
  0x20   : > { %v229_v3 = vld [vmem:[%s217_s9] sm:$0xff]  ;;  %v230_v4 = vld [vmem:[%s217_s9 + $0x8] sm:$0xff]  ;;  %vm343_vm7 = vmand %vm339_vm4, %vm342_vm5  ;;  %vm349_vm9 = vcmp.lt.s32.totalorder %v329_v10, %v348_v14  ;;  %v540_v16 = vsel %vm336_vm6, 1.0, %v652_v6  ;;  %vm353_vm11 = vcmp.ge.s32.totalorder %v329_v10, %v348_v14  ;;  %vm356_vm12 = vcmp.lt.s32.totalorder %v329_v10, %v355_v15 }
  0x21   : > { %562 = vmatprep.mubr.msk.f32.mxu0 %vm240_vm0, %v229_v3  ;;  %v542_v17 = vsel %vm343_vm7, 1.0, %v652_v6  ;;  %vm350_vm10 = vmand %vm346_vm8, %vm349_vm9  ;;  %vm366_vm2 = vcmask 1043456   ;;  %vm368_vm3 = vcmask 1044480   ;;  %vm370_vm4 = vcmask 1045504  }
  0x22   : > { %563 = vmatmul.mubr.msk.f32.vlgmr.msra.gmra.mrb[0].mxu0 %vm240_vm0, %v230_v4  ;;  %v544_v19 = vsel %vm350_vm10, 1.0, %v652_v6  ;;  %vm357_vm14 = vmand %vm353_vm11, %vm356_vm12  ;;  %v361_v20 = vsel %vm360_vm13, %v540_v16, %v542_v17  ;;  %vm372_vm5 = vcmask 1046528   ;;  %vm464_vm6 = vcmask 7168  }
  0x23   : > { %v546_v25 = vsel %vm357_vm14, 1.0, %v652_v6  ;;  %v363_v26 = vsel %vm362_vm15, %v361_v20, %v544_v19 }
  0x24   : > { %v365_v27 = vsel %vm364_vm1, %v363_v26, %v546_v25 }
  0x25   : > { %v367_v28 = vsel %vm366_vm2, %v365_v27, 0.0 }
  0x26   : > { %v369_v29 = vsel %vm368_vm3, %v367_v28, 0.0 }
  0x27   : > { %v371_v32 = vsel %vm370_vm4, %v369_v29, 0.0 }
  0x28   : > { %v373_v34 = vsel %vm372_vm5, %v371_v32, 0.0 }
  0xf5   : > { %v564_v21 = vpop.f32.mrb[0].mxu0 }
  0xf6   : > { %v319_v22 = vadd.f32 %v564_v21, %v535_v18  ;;  %v313_v23 = vpop.f32.mrb[1].mxu0 }
  0xf7   : > { %v314_v24 = vadd.f32 %v535_v18, %v313_v23 }
  0xf8   : > { %607 = vtanh.f32 %v319_v22 }
  0xf9   : > { %609 = vtanh.f32 %v314_v24 }
 0x102   : > { %v608_v30 = vpop.eup %607 }
 0x103   : > { %v610_v31 = vpop.eup %609 }
 0x104   : > { %v577_v33 = vpack.c.bf16 %v608_v30, %v610_v31 }
 0x106   : > { %578 = vmatpush3.bf16.msra.mxu1 %v577_v33 }
 0x109   : > { %570 = vmatmul.mubr.msk.f32.vlgmr.msra.gmra.mrb[0].mxu1 %vm240_vm0, %v373_v34 }
 0x1dc   : > { %v444_v36 = vpop.f32.mrb[0].mxu1 }
 0x1dd   : > { %v571_v37 = vpop.f32.mrb[1].mxu1  ;;  %v461_v38 = vmul.f32 %v548_v35, %v444_v36 }
 0x1df   : > { %462 = vadd.xlane.f32.xlu0 %v461_v38 }
 0x26c   : > { %v463_v39 = vpop.xlane.xlu0 %462 }
 0x26d   : > { %465 = vst.msk [vmem:[%s223_s26] sm:$0xff] %vm464_vm6, %v463_v39 }
 0x26e PF: > { %s21_s25 = sadd.s32 1, %s647_s25   ;;  %s746_s23 = smov %s643_s24 }
 0x26f   : > { %p18_p11 = scmp.ge.s32.totalorder %s21_s25, 4   ;;  %s747_s24 = smov %s749_s0 }
 0x271   :  { %20 = sbr.rel (!%p18_p11) target bundleno = 17 (0x11), region = 74 }

</bundles_post_ra>
